<compile_context>
chip_gen: v6e
topology: v6e:2x2x1
jax: 0.10.0
libtpu: 0.0.40
codegen_flags: <defaults>
</compile_context>

<pallas_src>
import functools

import numpy as np

import jax
import jax.numpy as jnp
from jax.experimental import pallas as pl
from jax.experimental.pallas import tpu as pltpu


_FLAT_PLANE_LIMIT = 256 * 1024  # planes up to this many bytes use the flat path


def _vmem_capacity_bytes():
    try:
        return int(pltpu.get_tpu_info().vmem_capacity_bytes)
    except Exception:
        return 64 * 1024 * 1024  # conservative (v7x per-core VMEM)


# --------------------------------------------------------------------------
# Flat path: small/medium planes, blocks of whole planes on a (NC, HW) view.
# --------------------------------------------------------------------------
def _grad_flat_kernel(cmask_ref, x_ref, o_ref, *, w):
    """cmask_ref: (2, HW) f32 {0,1}; row0 = (col != W-1), row1 = (col != 0).
    x_ref / o_ref: (TB, HW) with the flattened H*W image axis on lanes."""
    x = x_ref[...]                      # raw dtype; rolls are value-exact
    hw = x.shape[-1]
    f32 = jnp.float32

    def sh(shift):
        s = shift % hw                  # static, non-negative lane shift
        return x if s == 0 else pltpu.roll(x, s, axis=1)

    # Row-border masks generated in-kernel (no operand, free VPU filler).
    idx = jax.lax.broadcasted_iota(jnp.int32, (1, hw), 1)
    m_dn = (idx < hw - w).astype(f32)   # x[h+1, w] in bounds (not bottom row)
    m_up = (idx >= w).astype(f32)       # x[h-1, w] in bounds (not top row)

    # Vertical gradient first; squared into the accumulator before the
    # horizontal temporaries are created (fewer live f32 tiles).
    v = sh(-w).astype(f32) * m_dn - sh(w).astype(f32) * m_up
    acc = v * v

    cm = cmask_ref[...]                 # (2, HW) f32
    g = sh(-1).astype(f32) * cm[0:1, :] - sh(1).astype(f32) * cm[1:2, :]
    acc = acc + g * g + f32(1e-6)

    o_ref[...] = jnp.sqrt(acc).astype(o_ref.dtype)


def _gradient_flat(x, nc, hw, w, itemsize, target, vmem_cap, cost):
    xf = x.reshape(nc, hw)              # contiguous reshape: free, no copy

    # Planes per block.  No wrapper-side padding: either tb divides nc, tb==nc
    # (full second-minor dim is tiling-legal), or Pallas masks the ragged
    # last block (safe: planes are independent).
    tb = max(1, target // (hw * itemsize))
    if tb >= nc:
        tb = nc
        if nc >= 16:
            # Prefer >= 2 grid steps (megacore) when a mult-of-8 divisor exists.
            for cand in range((nc // 2) // 8 * 8, 7, -8):
                if nc % cand == 0:
                    tb = cand
                    break
    else:
        tb = max(8, (tb // 8) * 8)
        for cand in range(tb, 7, -8):   # prefer a divisor -> no ragged block
            if nc % cand == 0:
                tb = cand
                break
    grid = pl.cdiv(nc, tb)
    # TODO(synk): for nc <= 8 with large HW the grid is 1; H-axis blocking with
    # a +/-1-row halo would expose >= 2 steps for megacore in that corner case.

    # W-periodic column-border masks: tiny f32 operand, constant across the
    # grid (Pallas re-uses the block; only fetched once).
    col = np.arange(hw) % w
    cmask = jnp.asarray(np.stack([col != w - 1, col != 0]).astype(np.float32))

    block_raw = tb * hw * itemsize
    block_f32 = tb * hw * 4
    mask_bytes = 2 * 8 * hw * 4         # (8, HW)-padded, double-buffered
    need = 4 * block_raw + 6 * block_f32 + mask_bytes
    vmem_limit = int(min(0.75 * vmem_cap, max(32 * 1024 * 1024, need)))

    return pl.pallas_call(
        functools.partial(_grad_flat_kernel, w=w),
        out_shape=jax.ShapeDtypeStruct((nc, hw), x.dtype),
        grid_spec=pltpu.PrefetchScalarGridSpec(
            num_scalar_prefetch=0,
            grid=(grid,),
            in_specs=[
                pl.BlockSpec((2, hw), lambda i: (0, 0)),   # column masks
                pl.BlockSpec((tb, hw), lambda i: (i, 0)),  # input planes
            ],
            out_specs=pl.BlockSpec((tb, hw), lambda i: (i, 0)),
        ),
        compiler_params=pltpu.CompilerParams(
            dimension_semantics=("parallel",),
            vmem_limit_bytes=vmem_limit,
        ),
        cost_estimate=cost,
    )(cmask, xf)


# --------------------------------------------------------------------------
# Plane path: large planes, (tb, H, W) blocks; tb lives on the first (untiled)
# axis so it can be as small as one plane -> VMEM-safe on v7x.
# --------------------------------------------------------------------------
def _grad_plane_kernel(x_ref, o_ref):
    """x_ref / o_ref: (TB, H, W); each slice along dim 0 is one image plane."""
    tb, h, w = x_ref.shape
    f32 = jnp.float32

    # Border masks from iota comparisons (no operand); kept (H,1)/(1,W) so the
    # broadcasts stay cheap and the temporaries small.
    row = jax.lax.broadcasted_iota(jnp.int32, (h, 1), 0)
    col = jax.lax.broadcasted_iota(jnp.int32, (1, w), 1)
    m_dn = (row < h - 1).astype(f32)    # x[h+1, w] in bounds
    m_up = (row >= 1).astype(f32)       # x[h-1, w] in bounds
    m_rt = (col < w - 1).astype(f32)    # x[h, w+1] in bounds
    m_lf = (col >= 1).astype(f32)       # x[h, w-1] in bounds

    def sh(arr, shift, axis):
        n = arr.shape[axis]
        s = shift % n
        return arr if s == 0 else pltpu.roll(arr, s, axis=axis)

    def one(i, carry):
        xi = x_ref[i]                   # (H, W), raw dtype
        v = sh(xi, -1, 0).astype(f32) * m_dn - sh(xi, 1, 0).astype(f32) * m_up
        acc = v * v
        g = sh(xi, -1, 1).astype(f32) * m_rt - sh(xi, 1, 1).astype(f32) * m_lf
        acc = acc + g * g + f32(1e-6)
        o_ref[i] = jnp.sqrt(acc).astype(o_ref.dtype)
        return carry

    jax.lax.fori_loop(0, tb, one, 0, unroll=True)


def _gradient_planes(x, nc, h, w, itemsize, target, vmem_cap, cost):
    x3 = x.reshape(nc, h, w)
    plane_bytes = h * w * itemsize

    tb = max(1, target // plane_bytes)
    tb = min(tb, nc)
    if tb == nc and nc >= 2:
        tb = (nc + 1) // 2              # >= 2 grid steps (megacore / pipeline)
    for cand in range(tb, 0, -1):       # prefer a divisor of nc
        if nc % cand == 0:
            tb = cand
            break
    grid = pl.cdiv(nc, tb)

    block_raw = tb * plane_bytes
    block_f32 = tb * h * w * 4
    need = 4 * block_raw + 6 * block_f32
    vmem_limit = int(min(0.75 * vmem_cap, max(32 * 1024 * 1024, need)))
    # TODO(synk): planes so large that one (1, H, W) block plus its f32
    # temporaries exceed ~48 MiB (e.g. 4k x 4k f32) need H-axis blocking with a
    # +/-1-row halo; not implemented here.

    return pl.pallas_call(
        _grad_plane_kernel,
        out_shape=jax.ShapeDtypeStruct((nc, h, w), x.dtype),
        grid_spec=pltpu.PrefetchScalarGridSpec(
            num_scalar_prefetch=0,
            grid=(grid,),
            in_specs=[pl.BlockSpec((tb, h, w), lambda i: (i, 0, 0))],
            out_specs=pl.BlockSpec((tb, h, w), lambda i: (i, 0, 0)),
        ),
        compiler_params=pltpu.CompilerParams(
            dimension_semantics=("parallel",),
            vmem_limit_bytes=vmem_limit,
        ),
        cost_estimate=cost,
    )(x3)


# --------------------------------------------------------------------------
# Public wrapper
# --------------------------------------------------------------------------
def get_gradient(x):
    """x: (N, C, H, W) float -> (N, C, H, W), same dtype."""
    N, C, H, W = x.shape
    nc, hw = N * C, H * W
    itemsize = int(jnp.dtype(x.dtype).itemsize)
    plane_bytes = hw * itemsize

    vmem_cap = _vmem_capacity_bytes()
    # v5e/v6e (128 MiB VMEM): ~4 MiB tiles sit at the HBM-roofline knee.
    # v7x (64 MiB VMEM): stay at ~2 MiB so double-buffers + f32 temps fit.
    target = 2 * 1024 * 1024 if vmem_cap <= 64 * 1024 * 1024 else 4 * 1024 * 1024

    total = nc * hw
    cost = pl.CostEstimate(flops=10 * total, transcendentals=total,
                           bytes_accessed=2 * total * itemsize)

    if plane_bytes <= _FLAT_PLANE_LIMIT:
        out = _gradient_flat(x, nc, hw, W, itemsize, target, vmem_cap, cost)
    else:
        out = _gradient_planes(x, nc, H, W, itemsize, target, vmem_cap, cost)
    return out.reshape(N, C, H, W)


def get_gradient_ref(x):
    """Pure-JAX reference matching the PyTorch forward exactly."""
    xp_h = jnp.pad(x, ((0, 0), (0, 0), (1, 1), (0, 0)))
    v = xp_h[:, :, 2:, :] - xp_h[:, :, :-2, :]
    xp_w = jnp.pad(x, ((0, 0), (0, 0), (0, 0), (1, 1)))
    g = xp_w[:, :, :, 2:] - xp_w[:, :, :, :-2]
    return jnp.sqrt(v * v + g * g + 1e-6)


if __name__ == "__main__":
    key = jax.random.PRNGKey(0)

    # Primary test: required small shape (exercises the flat, lane-dense path).
    x = jax.random.normal(key, (2, 4, 16, 16), dtype=jnp.float32)
    out = jax.block_until_ready(get_gradient(x))
    ref = get_gradient_ref(x)
    assert out.shape == x.shape, out.shape
    assert jnp.allclose(out, ref, atol=1e-5, rtol=1e-5), "mismatch vs reference"

    # Second test: nc not a multiple of 8 -> full-dim block, no wrapper padding.
    x2 = jax.random.normal(jax.random.PRNGKey(0), (3, 4, 16, 16),
                           dtype=jnp.float32)
    out2 = jax.block_until_ready(get_gradient(x2))
    assert jnp.allclose(out2, get_gradient_ref(x2), atol=1e-5, rtol=1e-5), \
        "mismatch vs reference (nc=12)"

    print("KERNEL_OK")
</pallas_src>

<mosaic_0001>
module attributes {stable_mosaic.version = 11 : i64} {
  func.func @_grad_flat_kernel(%arg0: i32, %arg1: memref<2x256xf32, #tpu.memory_space<vmem>>, %arg2: memref<8x256xf32, #tpu.memory_space<vmem>>, %arg3: memref<8x256xf32, #tpu.memory_space<vmem>>) attributes {dimension_semantics = [#tpu.dimension_semantics<parallel>], iteration_bounds = array<i64: 1>, scalar_prefetch = 0 : i64, scratch_operands = 0 : i64, tpu.core_type = #tpu.core_type<tc>, window_params = [{pipeline_mode = #tpu.pipeline_mode<synchronous>, transform_indices = @transform_0, window_bounds = array<i64: 2, 256>}, {transform_indices = @transform_1, window_bounds = array<i64: 8, 256>}, {transform_indices = @transform_2, window_bounds = array<i64: 8, 256>}]} {
    %c0 = arith.constant 0 : index
    %c0_0 = arith.constant 0 : index
    %0 = vector.load %arg2[%c0, %c0_0] : memref<8x256xf32, #tpu.memory_space<vmem>>, vector<8x256xf32>
    %1 = tpu.iota {dimensions = array<i32: 1>} : vector<1x256xi32>
    %c240_i32 = arith.constant 240 : i32
    %2 = vector.broadcast %c240_i32 : i32 to vector<1x256xi32>
    %3 = arith.cmpi slt, %1, %2 : vector<1x256xi32>
    %4 = arith.extui %3 : vector<1x256xi1> to vector<1x256xi32>
    %5 = arith.sitofp %4 : vector<1x256xi32> to vector<1x256xf32>
    %c16_i32 = arith.constant 16 : i32
    %6 = vector.broadcast %c16_i32 : i32 to vector<1x256xi32>
    %7 = arith.cmpi sge, %1, %6 : vector<1x256xi32>
    %8 = arith.extui %7 : vector<1x256xi1> to vector<1x256xi32>
    %9 = arith.sitofp %8 : vector<1x256xi32> to vector<1x256xf32>
    %c240_i32_1 = arith.constant 240 : i32
    %10 = tpu.dynamic_rotate %0 by %c240_i32_1 dim 1 : vector<8x256xf32>, i32 -> vector<8x256xf32>
    %11 = vector.broadcast %5 : vector<1x256xf32> to vector<8x256xf32>
    %12 = arith.mulf %10, %11 : vector<8x256xf32>
    %c16_i32_2 = arith.constant 16 : i32
    %13 = tpu.dynamic_rotate %0 by %c16_i32_2 dim 1 : vector<8x256xf32>, i32 -> vector<8x256xf32>
    %14 = vector.broadcast %9 : vector<1x256xf32> to vector<8x256xf32>
    %15 = arith.mulf %13, %14 : vector<8x256xf32>
    %16 = arith.subf %12, %15 : vector<8x256xf32>
    %17 = arith.mulf %16, %16 : vector<8x256xf32>
    %c0_3 = arith.constant 0 : index
    %c0_4 = arith.constant 0 : index
    %18 = vector.load %arg1[%c0_3, %c0_4] : memref<2x256xf32, #tpu.memory_space<vmem>>, vector<2x256xf32>
    %c255_i32 = arith.constant 255 : i32
    %19 = tpu.dynamic_rotate %0 by %c255_i32 dim 1 : vector<8x256xf32>, i32 -> vector<8x256xf32>
    %20 = vector.extract_strided_slice %18 {offsets = [0, 0], sizes = [1, 256], strides = [1, 1]} : vector<2x256xf32> to vector<1x256xf32>
    %21 = vector.broadcast %20 : vector<1x256xf32> to vector<8x256xf32>
    %22 = arith.mulf %19, %21 : vector<8x256xf32>
    %c1_i32 = arith.constant 1 : i32
    %23 = tpu.dynamic_rotate %0 by %c1_i32 dim 1 : vector<8x256xf32>, i32 -> vector<8x256xf32>
    %24 = vector.extract_strided_slice %18 {offsets = [1, 0], sizes = [1, 256], strides = [1, 1]} : vector<2x256xf32> to vector<1x256xf32>
    %25 = vector.broadcast %24 : vector<1x256xf32> to vector<8x256xf32>
    %26 = arith.mulf %23, %25 : vector<8x256xf32>
    %27 = arith.subf %22, %26 : vector<8x256xf32>
    %28 = arith.mulf %27, %27 : vector<8x256xf32>
    %29 = arith.addf %17, %28 : vector<8x256xf32>
    %cst = arith.constant 9.99999997E-7 : f32
    %30 = vector.broadcast %cst : f32 to vector<8x256xf32>
    %31 = arith.addf %29, %30 : vector<8x256xf32>
    %32 = math.sqrt %31 : vector<8x256xf32>
    %c0_5 = arith.constant 0 : index
    %c0_6 = arith.constant 0 : index
    %33 = vector.load %arg3[%c0_5, %c0_6] : memref<8x256xf32, #tpu.memory_space<vmem>>, vector<8x256xf32>
    tpu.vector_store %arg3[%c0_5, %c0_6], %32 {strides = array<i32>} : memref<8x256xf32, #tpu.memory_space<vmem>>, vector<8x256xf32>,
    return
  }
  func.func @transform_0(%arg0: i32) -> (i32, i32) {
    %c0_i32 = arith.constant 0 : i32
    %c0_i32_0 = arith.constant 0 : i32
    %c0_i32_1 = arith.constant 0 : i32
    return %c0_i32, %c0_i32_0 : i32, i32
  }
  func.func @transform_1(%arg0: i32) -> (i32, i32) {
    %c0_i32 = arith.constant 0 : i32
    %c0_i32_0 = arith.constant 0 : i32
    return %arg0, %c0_i32 : i32, i32
  }
  func.func @transform_2(%arg0: i32) -> (i32, i32) {
    %c0_i32 = arith.constant 0 : i32
    %c0_i32_0 = arith.constant 0 : i32
    return %arg0, %c0_i32 : i32, i32
  }
}

</mosaic_0001>

<bundles_post_ra>
// kernel: tpu_custom_call.1
= control target key start
LH: loop header
LB: loop body
LE: loop exit
PB: predicated region body
PF: predicated region fallthrough
CT: control target
= control target key end

     0   :  { %7 = vsyncpa [#allocation3], 0  ;;  %s287_s0 = inlined_call_operand.hbm [shape: f32[2,256], index: 0, kind: input, shape index: {}]   ;;  %s288_s1 = inlined_call_operand.hbm [shape: f32[8,256], index: 1, kind: input, shape index: {}]   ;;  %s289_s2 = inlined_call_operand.hbm [shape: f32[8,256], index: 2, kind: output, shape index: {}]  }
   0x1   :  { %8 = vsyncpa [#allocation6], 0 }
   0x2   :  { %9 = vsyncpa [#allocation4], 0  ;;  %s251_s9 = smov [#allocation2]   ;;  %s252_s11 = smov [#allocation5]  }
   0x3   :  { %s16_s10 = sshll.u32 %s251_s9, 4  ;;  %s26_s12 = sshll.u32 %s252_s11, 4  ;;  %s17_s10 = int_to_ptr.vmem [resolvable:$true] %s16_s10  ;;  %s27_s12 = int_to_ptr.vmem [resolvable:$true] %s26_s12 }
   0x4   :  { %s193_s13 = scalar_lea.vmem %s17_s10, 64  ;;  %p198_p1 = scmp.lt.s32.totalorder %s17_s10, %s17_s10 }
   0x5   :  { %p194_p0 = scmp.ne.s32.totalorder %s17_s10, %s193_s13  ;;  %p199_p2 = scmp.lt.s32.totalorder %s193_s13, %s193_s13 }
   0x7   :  { %p200_p3 = por %p199_p2, %p198_p1 }
   0x9   :  { %p201_p4 = pnand %p200_p3, %p194_p0 }
   0xb   :  { %204 = shalt.err (!%p201_p4)
}
   0xc   :  { %19 = dma.hbm_to_vmem [thread:$0]  %s287_s0, 64, %s17_s10, [#allocation3]  }
   0xd   :  { %s213_s16 = scalar_lea.vmem %s27_s12, 256  ;;  %p218_p6 = scmp.lt.s32.totalorder %s27_s12, %s27_s12 }
   0xe   :  { %p214_p5 = scmp.ne.s32.totalorder %s27_s12, %s213_s16  ;;  %p219_p7 = scmp.lt.s32.totalorder %s213_s16, %s213_s16 }
  0x10   :  { %p220_p8 = por %p219_p7, %p218_p6 }
  0x12   :  { %p221_p9 = pnand %p220_p8, %p214_p5 }
  0x14   :  { %224 = shalt.err (!%p221_p9)
}
  0x15   :  { %29 = dma.hbm_to_vmem [thread:$0]  %s288_s1, 256, %s27_s12, [#allocation6]  }
  0x16   :  { %245 = dma.done.wait [#allocation3], 64  }
  0x17   :  { %246 = vsyncadd [#allocation3], 4294967232 }
  0x18   :  { %247 = dma.done.wait [#allocation6], 256  }
  0x19   :  { %248 = vsyncadd [#allocation6], 4294967040  ;;  %v36_v0 = vld [vmem:[#allocation5] sm:$0xff]  ;;  %s253_s19 = smov 16   ;;  %s254_s20 = smov 112   ;;  %v37_v1 = vld [vmem:[#allocation5 + $0x8] sm:$0xff]  ;;  %v38_v2 = vlaneseq }
  0x1a   :  { %62 = vrot.lane.b32.xlu1 %v36_v0, %s253_s19  ;;  %53 = vrot.lane.b32.xlu0 %v36_v0, %s254_s20  ;;  %s255_s0 = smov 127   ;;  %s256_s21 = smov 1   ;;  %v75_v10 = vld [vmem:[#allocation2] sm:$0xf]  ;;  %v257_v15 = vmov 0.0  }
  0x1b   :  { %v39_v3 = vand.u32 127, %v38_v2  ;;  %v85_v4 = vshrl.u32 %v38_v2, 7  ;;  %s258_s1 = smov [#allocation7]  }
  0x1c   :  { %s161_s22 = sshll.u32 %s258_s1, 4  ;;  %s162_s22 = int_to_ptr.vmem [resolvable:$true] %s161_s22 }
  0x1d   :  { %v40_v5 = vadd.s32 128, %v39_v3  ;;  %v86_v8 = vsub.s32 0, %v85_v4  ;;  %v90_v9 = vsub.s32 2, %v85_v4  ;;  %vm47_vm0 = vcmp.ge.s32.totalorder %v39_v3, 16  ;;  %s225_s23 = scalar_lea.vmem %s162_s22, 256  ;;  %p230_p11 = scmp.lt.s32.totalorder %s162_s22, %s162_s22 }
  0x1e   :  { %64 = vrot.lane.b32.xlu1 %v37_v1, %s253_s19  ;;  %55 = vrot.lane.b32.xlu0 %v37_v1, %s254_s20  ;;  %v113_v11 = vsub.s32 1, %v85_v4  ;;  %v117_v12 = vsub.s32 3, %v85_v4  ;;  %vm66_vm2 = vcmp.lt.s32.totalorder %v39_v3, 16  ;;  %vm57_vm3 = vcmp.lt.s32.totalorder %v39_v3, 112  ;;  %p226_p10 = scmp.ne.s32.totalorder %s162_s22, %s225_s23  ;;  %p231_p12 = scmp.lt.s32.totalorder %s225_s23, %s225_s23 }
  0x1f   :  { %vm42_vm1 = vcmp.lt.s32.totalorder %v40_v5, 240  ;;  %v172_v16 = vsel %vm47_vm0, 1.0, %v257_v15  ;;  %v87_v18 = vrot.slane %v75_v10, %v86_v8  ;;  %v91_v19 = vrot.slane %v75_v10, %v90_v9 }
  0x20   :  { %v171_v17 = vsel %vm42_vm1, 1.0, %v257_v15  ;;  %v114_v22 = vrot.slane %v75_v10, %v113_v11  ;;  %v118_v23 = vrot.slane %v75_v10, %v117_v12  ;;  %vm80_vm4 = vcmp.lt.s32.totalorder %v39_v3, 127  ;;  %p232_p13 = por %p231_p12, %p230_p11 }
  0x21   :  { %vm108_vm5 = vcmp.lt.s32.totalorder %v39_v3, 1  ;;  %v97_v28 = vrot.slane %v87_v18, %v86_v8  ;;  %v101_v29 = vrot.slane %v91_v19, %v86_v8 }
  0x22   :  { %78 = vrot.lane.b32.xlu1 %v37_v1, %s255_s0  ;;  %76 = vrot.lane.b32.xlu0 %v36_v0, %s255_s0  ;;  %v124_v30 = vrot.slane %v114_v22, %v113_v11  ;;  %v128_v31 = vrot.slane %v118_v23, %v113_v11  ;;  %p233_p0 = pnand %p232_p13, %p226_p10 }
  0x26   :  { %106 = vrot.lane.b32.xlu1 %v37_v1, %s256_s21  ;;  %104 = vrot.lane.b32.xlu0 %v36_v0, %s256_s21 }
  0x8c   :  { %v63_v6 = vpop.permute.xlu1 %62  ;;  %v54_v7 = vpop.permute.xlu0 %53 }
  0x90   :  { %v65_v13 = vpop.permute.xlu1 %64  ;;  %v56_v14 = vpop.permute.xlu0 %55 }
  0x91   :  { %v68_v20 = vsel %vm66_vm2, %v65_v13, %v63_v6  ;;  %v59_v21 = vsel %vm57_vm3, %v56_v14, %v54_v7  ;;  %v67_v34 = vsel %vm66_vm2, %v63_v6, %v65_v13  ;;  %v58_v35 = vsel %vm57_vm3, %v54_v7, %v56_v14 }
  0x92   :  { %v69_v26 = vmul.f32 %v172_v16, %v68_v20  ;;  %v61_v27 = vmul.f32 %v171_v17, %v59_v21 }
  0x94   :  { %v79_v24 = vpop.permute.xlu1 %78  ;;  %v77_v25 = vpop.permute.xlu0 %76  ;;  %v71_v38 = vsub.f32 %v58_v35, %v69_v26  ;;  %v72_v39 = vsub.f32 %v61_v27, %v67_v34 }
  0x95   :  { %v81_v32 = vsel %vm80_vm4, %v77_v25, %v79_v24  ;;  %v82_v33 = vsel %vm80_vm4, %v79_v24, %v77_v25 }
  0x96   :  { %v102_v42 = vmul.f32 %v97_v28, %v81_v32  ;;  %v103_v43 = vmul.f32 %v101_v29, %v82_v33  ;;  %v73_v48 = vmul.f32 %v71_v38, %v71_v38  ;;  %v74_v49 = vmul.f32 %v72_v39, %v72_v39 }
  0x98   :  { %v107_v36 = vpop.permute.xlu1 %106  ;;  %v105_v37 = vpop.permute.xlu0 %104 }
  0x99   :  { %v109_v40 = vsel %vm108_vm5, %v105_v37, %v107_v36  ;;  %v110_v41 = vsel %vm108_vm5, %v107_v36, %v105_v37 }
  0x9a   :  { %v129_v44 = vmul.f32 %v124_v30, %v110_v41  ;;  %v130_v45 = vmul.f32 %v128_v31, %v109_v40 }
  0x9c   :  { %v131_v46 = vsub.f32 %v102_v42, %v129_v44  ;;  %v132_v47 = vsub.f32 %v103_v43, %v130_v45 }
  0x9e   :  { %v133_v50 = vmul.f32 %v131_v46, %v131_v46  ;;  %v134_v51 = vmul.f32 %v132_v47, %v132_v47 }
  0xa0   :  { %v135_v52 = vadd.f32 %v133_v50, %v73_v48  ;;  %v136_v53 = vadd.f32 %v134_v51, %v74_v49 }
  0xa2   :  { %v137_v54 = vadd.f32 1e-06, %v135_v52  ;;  %v138_v55 = vadd.f32 1e-06, %v136_v53 }
  0xa4   :  { %181 = vrsqrt.f32 %v137_v54  ;;  %vm141_vm6 = vcmp.eq.f32.partialorder %v137_v54, inf  ;;  %v144_v59 = vand.u32 2147483648, %v137_v54  ;;  %vm143_vm7 = vcmp.eq.f32.partialorder %v137_v54, 0.0 }
  0xa5   :  { %183 = vrsqrt.f32 %v138_v55  ;;  %vm148_vm8 = vcmp.eq.f32.partialorder %v138_v55, inf  ;;  %v151_v62 = vand.u32 2147483648, %v138_v55  ;;  %vm150_vm9 = vcmp.eq.f32.partialorder %v138_v55, 0.0 }
  0xb1   :  { %v182_v56 = vpop.eup %181 }
  0xb2   :  { %v184_v57 = vpop.eup %183  ;;  %v140_v58 = vmul.f32 %v182_v56, %v137_v54 }
  0xb3   :  { %v147_v60 = vmul.f32 %v184_v57, %v138_v55 }
  0xb4   :  { %v142_v61 = vsel %vm141_vm6, %v137_v54, %v140_v58 }
  0xb5   :  { %v145_v63 = vsel %vm143_vm7, %v144_v59, %v142_v61  ;;  %v149_v0 = vsel %vm148_vm8, %v138_v55, %v147_v60 }
  0xb6   :  { %v152_v1 = vsel %vm150_vm9, %v151_v62, %v149_v0  ;;  %153 = vst [vmem:[#allocation7] sm:$0xff] %v145_v63 }
  0xb7   :  { %154 = vst [vmem:[#allocation7 + $0x8] sm:$0xff] %v152_v1 }
  0xb8   :  { %236 = shalt.err (!%p233_p0)
}
  0xb9   :  { %164 = dma.vmem_to_hbm [thread:$0]  %s162_s22, 256, %s289_s2, [#allocation4]  }
  0xba   :  { %249 = dma.done.wait [#allocation4], 256  }
  0xbb   :  { %250 = vsyncadd [#allocation4], 4294967040 }
  0xbc   :  { %168 = vsyncpa [#allocation3], 1 }
  0xbd   :  { %169 = vsyncpa [#allocation6], 1 }
  0xbe   :  { %170 = vsyncpa [#allocation4], 1 }

</bundles_post_ra>
